<compile_context>
chip_gen: v7x
topology: tpu7x:2x2x1
jax: 0.10.0
libtpu: 0.0.40
codegen_flags: <defaults>
</compile_context>

<pallas_src>
import functools
import math

import jax
import jax.numpy as jnp
from jax.experimental import pallas as pl
from jax.experimental.pallas import tpu as pltpu


# ----------------------------- Pallas kernel ------------------------------ #

def hybrid_xor_kernel(x_ref, g_ref, o_ref):
    # x_ref: (2, TR, 128) f32 VMEM   x_ref[0] = feature 0, x_ref[1] = feature 1
    # g_ref: (9,)         f32 SMEM   3x3 quadratic form G (row-major), bias in G[0,0]
    # o_ref: (TR, 128)    f32 VMEM
    a0 = x_ref[0] * jnp.pi
    a1 = x_ref[1] * jnp.pi
    c0 = jnp.cos(a0)
    s0 = jnp.sin(a0)
    c1 = jnp.cos(a1)
    s1 = jnp.sin(a1)
    # out = u0^T G u1, u_i = (1, cos(pi x_i), sin(pi x_i));   ~16 VPU ops/elem.
    t0 = g_ref[0] + g_ref[1] * c1 + g_ref[2] * s1
    t1 = g_ref[3] + g_ref[4] * c1 + g_ref[5] * s1
    t2 = g_ref[6] + g_ref[7] * c1 + g_ref[8] * s1
    o_ref[...] = t0 + c0 * t1 + s0 * t2


# ------------------------------- wrapper ----------------------------------- #

def _round_up(n, m):
    return ((n + m - 1) // m) * m


def _choose_tile_rows(rows_pad, max_tile_rows):
    max_tile_rows = _round_up(max(max_tile_rows, 8), 8)
    if rows_pad > 8:
        # Aim for >=2 grid steps (megacore on v7x) whenever the batch allows.
        half = _round_up(-(-rows_pad // 2), 8)
        return max(8, min(max_tile_rows, half))
    return rows_pad


@functools.partial(jax.jit, static_argnames=("max_tile_rows",))
def hybrid_xor_forward(x, g_flat, *, max_tile_rows=1024):
    """x: (B, 2) f32 (same layout as the PyTorch module). Returns (B, 1)."""
    B = x.shape[0]
    lanes = 128

    rows = max(1, -(-B // lanes))                 # cdiv(B, 128)
    rows_pad = _round_up(rows, 8)
    tile_rows = _choose_tile_rows(rows_pad, max_tile_rows)
    rows_pad = _round_up(rows_pad, tile_rows)
    b_pad = rows_pad * lanes

    # Batch packed into (sublanes, lanes): (B, 2) -> (2, rows_pad, 128).
    xt = x.astype(jnp.float32).T                  # (2, B)
    xt = jnp.pad(xt, ((0, 0), (0, b_pad - B)))
    xt = xt.reshape(2, rows_pad, lanes)

    out = pl.pallas_call(
        hybrid_xor_kernel,
        out_shape=jax.ShapeDtypeStruct((rows_pad, lanes), jnp.float32),
        grid_spec=pltpu.PrefetchScalarGridSpec(
            num_scalar_prefetch=0,
            grid=(rows_pad // tile_rows,),
            in_specs=[
                pl.BlockSpec((2, tile_rows, lanes), lambda i: (0, i, 0)),
                pl.BlockSpec(memory_space=pltpu.MemorySpace.SMEM),
            ],
            out_specs=pl.BlockSpec((tile_rows, lanes), lambda i: (i, 0)),
        ),
        compiler_params=pltpu.CompilerParams(
            dimension_semantics=("parallel",)),
    )(xt, g_flat.astype(jnp.float32))

    return out.reshape(b_pad)[:B].reshape(B, 1)


# --------------------- parameter folding (plain JAX glue) ------------------ #

def _rot_matrix(phi, theta, omega):
    """PennyLane Rot(phi, theta, omega) = RZ(omega) RY(theta) RZ(phi)."""
    ct = jnp.cos(theta / 2)
    st = jnp.sin(theta / 2)
    return jnp.array(
        [[jnp.exp(-0.5j * (phi + omega)) * ct, -jnp.exp(0.5j * (phi - omega)) * st],
         [jnp.exp(-0.5j * (phi - omega)) * st,  jnp.exp(0.5j * (phi + omega)) * ct]],
        dtype=jnp.complex64,
    )


def strongly_entangling_unitary(weights):
    """4x4 unitary of StronglyEntanglingLayers(weights, wires=[0,1]).

    For 2 wires the imprimitive range is always 1: each layer applies
    Rot on wire 0, Rot on wire 1, then CNOT(0->1), CNOT(1->0).
    Basis ordering: index = 2*w0 + w1 (wire 0 most significant).
    """
    cnot01 = jnp.array([[1, 0, 0, 0], [0, 1, 0, 0], [0, 0, 0, 1], [0, 0, 1, 0]],
                       dtype=jnp.complex64)
    cnot10 = jnp.array([[1, 0, 0, 0], [0, 0, 0, 1], [0, 0, 1, 0], [0, 1, 0, 0]],
                       dtype=jnp.complex64)
    U = jnp.eye(4, dtype=jnp.complex64)
    for l in range(weights.shape[0]):
        r0 = _rot_matrix(weights[l, 0, 0], weights[l, 0, 1], weights[l, 0, 2])
        r1 = _rot_matrix(weights[l, 1, 0], weights[l, 1, 1], weights[l, 1, 2])
        layer = cnot10 @ cnot01 @ jnp.kron(r0, r1)
        U = layer @ U
    return U


def fold_params(U, lin_w, lin_b):
    """Fold U + PauliZ measurements + Linear(2,1) into a 3x3 quadratic form G.

    out(x) = u0^T G u1,  u_i = (1, cos(pi x_i), sin(pi x_i)),  bias in G[0,0].
    """
    w0, w1 = lin_w[0], lin_w[1]
    # Per-basis-state coefficients of (w0*Z0 + w1*Z1) in the probability basis.
    d = jnp.array([w0 + w1, w0 - w1, w1 - w0, -(w0 + w1)], dtype=jnp.float32)
    # psi0 = D @ v with v = (c0c1, c0s1, s0c1, s0s1) real, D = diag(1,-i,-i,-1).
    D = jnp.array([1.0, -1.0j, -1.0j, -1.0], dtype=jnp.complex64)
    W = (U * D[None, :]).astype(jnp.complex64)            # psi = W @ v
    Wr = jnp.real(W).astype(jnp.float32)
    Wi = jnp.imag(W).astype(jnp.float32)
    # sum_k d_k |psi_k|^2 = v^T M v, M symmetric 4x4.
    M = (jnp.einsum('k,kj,kl->jl', d, Wr, Wr)
         + jnp.einsum('k,kj,kl->jl', d, Wi, Wi))
    # v = kron(w0vec, w1vec), w_i w_i^T = 0.5*(I + cos(pi x_i) Z + sin(pi x_i) X).
    I2 = jnp.eye(2, dtype=jnp.float32)
    Z2 = jnp.array([[1.0, 0.0], [0.0, -1.0]], dtype=jnp.float32)
    X2 = jnp.array([[0.0, 1.0], [1.0, 0.0]], dtype=jnp.float32)
    B = jnp.stack([I2, Z2, X2])                            # (3, 2, 2)
    M4 = M.reshape(2, 2, 2, 2)                             # [j0, j1, l0, l1]
    G = 0.25 * jnp.einsum('abcd,xac,ybd->xy', M4, B, B)
    G = G.at[0, 0].add(lin_b[0])
    return G.reshape(9).astype(jnp.float32)


def reference_forward(x, U, lin_w, lin_b):
    """Pure-JAX complex statevector reference (for correctness check)."""
    a = x.astype(jnp.float32) * (jnp.pi * 0.5)
    c = jnp.cos(a)
    s = jnp.sin(a)
    psi0 = jnp.stack(
        [c[:, 0] * c[:, 1],
         -1j * c[:, 0] * s[:, 1],
         -1j * s[:, 0] * c[:, 1],
         -s[:, 0] * s[:, 1]],
        axis=1,
    ).astype(jnp.complex64)
    psi = psi0 @ U.T
    probs = jnp.abs(psi) ** 2
    z0 = probs[:, 0] + probs[:, 1] - probs[:, 2] - probs[:, 3]
    z1 = probs[:, 0] - probs[:, 1] + probs[:, 2] - probs[:, 3]
    z = jnp.stack([z0, z1], axis=1)
    return z @ lin_w.reshape(2, 1) + lin_b


# ---------------------------------- main ----------------------------------- #

if __name__ == "__main__":
    key = jax.random.PRNGKey(0)
    k_q, k_w, k_b, k_x = jax.random.split(key, 4)

    # Quantum layer weights: shape (6, 2, 3), init = rand * 2*pi
    q_weights = jax.random.uniform(k_q, (6, 2, 3), dtype=jnp.float32) * (2.0 * math.pi)

    # nn.Linear(2, 1) default init: U(-1/sqrt(2), 1/sqrt(2))
    bound = 1.0 / math.sqrt(2.0)
    lin_w = jax.random.uniform(k_w, (1, 2), dtype=jnp.float32, minval=-bound, maxval=bound)
    lin_b = jax.random.uniform(k_b, (1,), dtype=jnp.float32, minval=-bound, maxval=bound)

    # Fold the fixed circuit + measurement + Linear into one 3x3 quadratic form.
    U = strongly_entangling_unitary(q_weights)
    g_flat = fold_params(U, lin_w.reshape(2), lin_b)

    # Inputs: batch of XOR-style points in [0, 1), shape (8, 2)
    batch = 8
    x = jax.random.uniform(k_x, (batch, 2), dtype=jnp.float32)

    out = jax.block_until_ready(hybrid_xor_forward(x, g_flat))
    ref = jax.block_until_ready(reference_forward(x, U, lin_w.reshape(2), lin_b))
    assert out.shape == (batch, 1)
    assert jnp.allclose(out, ref, atol=3e-5, rtol=3e-5), (out, ref)

    # Multi-step grid path: exercises sublane+lane packing, batch padding,
    # and the >=2-step "parallel" grid (megacore on v7x).
    batch2 = 2500
    x2 = jax.random.uniform(jax.random.PRNGKey(1), (batch2, 2), dtype=jnp.float32)
    out2 = jax.block_until_ready(
        hybrid_xor_forward(x2, g_flat, max_tile_rows=8))
    ref2 = jax.block_until_ready(reference_forward(x2, U, lin_w.reshape(2), lin_b))
    assert out2.shape == (batch2, 1)
    assert jnp.allclose(out2, ref2, atol=3e-5, rtol=3e-5), (out2, ref2)

    print("KERNEL_OK")
</pallas_src>

<mosaic_0001>
module attributes {stable_mosaic.version = 11 : i64} {
  func.func @hybrid_xor_kernel(%arg0: i32, %arg1: memref<2x8x128xf32, #tpu.memory_space<vmem>>, %arg2: memref<9xf32, #tpu.memory_space<smem>>, %arg3: memref<8x128xf32, #tpu.memory_space<vmem>>) attributes {dimension_semantics = [#tpu.dimension_semantics<parallel>], iteration_bounds = array<i64: 1>, scalar_prefetch = 0 : i64, scratch_operands = 0 : i64, tpu.core_type = #tpu.core_type<tc>, window_params = [{transform_indices = @transform_0, window_bounds = array<i64: 2, 8, 128>}, {transform_indices = @transform_1, window_bounds = array<i64: 9>}, {transform_indices = @transform_2, window_bounds = array<i64: 8, 128>}]} {
    %c0 = arith.constant 0 : index
    %c0_0 = arith.constant 0 : index
    %c0_1 = arith.constant 0 : index
    %0 = vector.load %arg1[%c0, %c0_0, %c0_1] : memref<2x8x128xf32, #tpu.memory_space<vmem>>, vector<1x8x128xf32>
    %1 = vector.shape_cast %0 : vector<1x8x128xf32> to vector<8x128xf32>
    %cst = arith.constant 3.14159274 : f32
    %2 = vector.broadcast %cst : f32 to vector<8x128xf32>
    %3 = arith.mulf %1, %2 : vector<8x128xf32>
    %c1 = arith.constant 1 : index
    %c0_2 = arith.constant 0 : index
    %c0_3 = arith.constant 0 : index
    %4 = vector.load %arg1[%c1, %c0_2, %c0_3] : memref<2x8x128xf32, #tpu.memory_space<vmem>>, vector<1x8x128xf32>
    %5 = vector.shape_cast %4 : vector<1x8x128xf32> to vector<8x128xf32>
    %cst_4 = arith.constant 3.14159274 : f32
    %6 = vector.broadcast %cst_4 : f32 to vector<8x128xf32>
    %7 = arith.mulf %5, %6 : vector<8x128xf32>
    %8 = math.cos %3 : vector<8x128xf32>
    %9 = math.sin %3 : vector<8x128xf32>
    %10 = math.cos %7 : vector<8x128xf32>
    %11 = math.sin %7 : vector<8x128xf32>
    %c0_5 = arith.constant 0 : index
    %12 = memref.load %arg2[%c0_5] : memref<9xf32, #tpu.memory_space<smem>>
    %c1_6 = arith.constant 1 : index
    %13 = memref.load %arg2[%c1_6] : memref<9xf32, #tpu.memory_space<smem>>
    %14 = vector.broadcast %13 : f32 to vector<8x128xf32>
    %15 = arith.mulf %14, %10 : vector<8x128xf32>
    %16 = vector.broadcast %12 : f32 to vector<8x128xf32>
    %17 = arith.addf %16, %15 : vector<8x128xf32>
    %c2 = arith.constant 2 : index
    %18 = memref.load %arg2[%c2] : memref<9xf32, #tpu.memory_space<smem>>
    %19 = vector.broadcast %18 : f32 to vector<8x128xf32>
    %20 = arith.mulf %19, %11 : vector<8x128xf32>
    %21 = arith.addf %17, %20 : vector<8x128xf32>
    %c3 = arith.constant 3 : index
    %22 = memref.load %arg2[%c3] : memref<9xf32, #tpu.memory_space<smem>>
    %c4 = arith.constant 4 : index
    %23 = memref.load %arg2[%c4] : memref<9xf32, #tpu.memory_space<smem>>
    %24 = vector.broadcast %23 : f32 to vector<8x128xf32>
    %25 = arith.mulf %24, %10 : vector<8x128xf32>
    %26 = vector.broadcast %22 : f32 to vector<8x128xf32>
    %27 = arith.addf %26, %25 : vector<8x128xf32>
    %c5 = arith.constant 5 : index
    %28 = memref.load %arg2[%c5] : memref<9xf32, #tpu.memory_space<smem>>
    %29 = vector.broadcast %28 : f32 to vector<8x128xf32>
    %30 = arith.mulf %29, %11 : vector<8x128xf32>
    %31 = arith.addf %27, %30 : vector<8x128xf32>
    %c6 = arith.constant 6 : index
    %32 = memref.load %arg2[%c6] : memref<9xf32, #tpu.memory_space<smem>>
    %c7 = arith.constant 7 : index
    %33 = memref.load %arg2[%c7] : memref<9xf32, #tpu.memory_space<smem>>
    %34 = vector.broadcast %33 : f32 to vector<8x128xf32>
    %35 = arith.mulf %34, %10 : vector<8x128xf32>
    %36 = vector.broadcast %32 : f32 to vector<8x128xf32>
    %37 = arith.addf %36, %35 : vector<8x128xf32>
    %c8 = arith.constant 8 : index
    %38 = memref.load %arg2[%c8] : memref<9xf32, #tpu.memory_space<smem>>
    %39 = vector.broadcast %38 : f32 to vector<8x128xf32>
    %40 = arith.mulf %39, %11 : vector<8x128xf32>
    %41 = arith.addf %37, %40 : vector<8x128xf32>
    %42 = arith.mulf %8, %31 : vector<8x128xf32>
    %43 = arith.addf %21, %42 : vector<8x128xf32>
    %44 = arith.mulf %9, %41 : vector<8x128xf32>
    %45 = arith.addf %43, %44 : vector<8x128xf32>
    %c0_7 = arith.constant 0 : index
    %c0_8 = arith.constant 0 : index
    %46 = vector.load %arg3[%c0_7, %c0_8] : memref<8x128xf32, #tpu.memory_space<vmem>>, vector<8x128xf32>
    tpu.vector_store %arg3[%c0_7, %c0_8], %45 {strides = array<i32>} : memref<8x128xf32, #tpu.memory_space<vmem>>, vector<8x128xf32>,
    return
  }
  func.func @transform_0(%arg0: i32) -> (i32, i32, i32) {
    %c0_i32 = arith.constant 0 : i32
    %c0_i32_0 = arith.constant 0 : i32
    %c0_i32_1 = arith.constant 0 : i32
    return %c0_i32, %arg0, %c0_i32_0 : i32, i32, i32
  }
  func.func @transform_1(%arg0: i32) -> i32 {
    %c0_i32 = arith.constant 0 : i32
    %c0_i32_0 = arith.constant 0 : i32
    return %c0_i32 : i32
  }
  func.func @transform_2(%arg0: i32) -> (i32, i32) {
    %c0_i32 = arith.constant 0 : i32
    %c0_i32_0 = arith.constant 0 : i32
    return %arg0, %c0_i32 : i32, i32
  }
}

</mosaic_0001>

<bundles_post_ra>
// kernel: hybrid_xor_forward.1
= control target key start
LH: loop header
LB: loop body
LE: loop exit
PB: predicated region body
PF: predicated region fallthrough
CT: control target
= control target key end

     0   :  { %7 = vsyncpa [#allocation3], 0  ;;  %s704_s0 = inlined_call_operand.vmem [shape: f32[2,8,128], index: 0, kind: input, shape index: {}]   ;;  %s705_s1 = inlined_call_operand.vmem [shape: f32[9], index: 1, kind: input, shape index: {}]   ;;  %s706_s2 = inlined_call_operand.vmem [shape: f32[8,128], index: 2, kind: output, shape index: {}]  }
   0x1   :  { %s16_s11 = sshll.u32 %s705_s1, 4  ;;  %s17_s11 = int_to_ptr.vmem [resolvable:$true] %s16_s11 }
   0x2   :  { %s531_s12 = scalar_lea.vmem %s17_s11, 16  ;;  %p536_p1 = scmp.lt.s32.totalorder %s17_s11, %s17_s11 }
   0x3   :  { %p532_p0 = scmp.ne.s32.totalorder %s17_s11, %s531_s12  ;;  %p537_p2 = scmp.lt.s32.totalorder %s531_s12, %s531_s12 }
   0x5   :  { %p538_p3 = por %p537_p2, %p536_p1 }
   0x7   :  { %p539_p4 = pnand %p538_p3, %p532_p0 }
   0x9   :  { %542 = shalt.err (!%p539_p4)
}
   0xa   :  { %s545_s13 = smov [#allocation2]  }
   0xb   :  { %19 = dma.vmem_to_smem %s17_s11, 16, %s545_s13, [#allocation3]  }
   0xc   :  { %543 = dma.done.wait [#allocation3], 16  }
   0xd   :  { %544 = vsyncadd [#allocation3], 4294967280 }
   0xe   :  { %23 = sfence }
   0xf   :  { %v24_v0 = vld [vmem:[%s704_s0] sm:$0xff]  ;;  %v483_v1 = vld [vmem:[%s704_s0 + $0x8] sm:$0xff]  ;;  %v546_v26 = vmov 683565275   ;;  %v547_v28 = vmov 2475754826  }
  0x10   :  { %v576_v2 = vmul.f32 3.1415927, %v24_v0  ;;  %v578_v3 = vmul.f32 3.1415927, %v483_v1  ;;  %v548_v30 = vmov 2131351028  }
  0x11   :  { %v549_v32 = vmov 2102212464   ;;  %v550_v34 = vmov 920167782   ;;  %v551_v42 = vmov 1326507024  }
  0x12   :  { %v29_v4 = vand.u32 2147483647, %v576_v2  ;;  %v32_v5 = vand.u32 2139095040, %v576_v2  ;;  %v236_v6 = vand.u32 2147483647, %v578_v3  ;;  %v239_v7 = vand.u32 2139095040, %v578_v3 }
  0x13   :  { %vm31_vm14 = vcmp.lt.s32.totalorder %v576_v2, 0  ;;  %s658_s0 = sld [smem:[#allocation2]]  ;;  %s660_s1 = sld [smem:[#allocation2 + $0x1]] }
  0x14   :  { %v33_v8 = vshrl.u32 %v32_v5, 23  ;;  %v36_v9 = vand.u32 8388607, %v29_v4  ;;  %v240_v10 = vshrl.u32 %v239_v7, 23  ;;  %v243_v11 = vand.u32 8388607, %v236_v6 }
  0x15   :  { %vm642_vm15 = vcmp.le.f32.partialorder %v29_v4, 0.7853982  ;;  %s663_s18 = sld [smem:[#allocation2 + $0x2]]  ;;  %s665_s19 = sld [smem:[#allocation2 + $0x3]] }
  0x16   :  { %v484_v12 = vadd.s32 4294967169, %v33_v8  ;;  %v492_v13 = vadd.s32 4294967169, %v240_v10  ;;  %v37_v15 = vor.u32 8388608, %v36_v9  ;;  %v244_v16 = vor.u32 8388608, %v243_v11  ;;  %s669_s20 = sld [smem:[#allocation2 + $0x4]]  ;;  %s671_s21 = sld [smem:[#allocation2 + $0x5]] }
  0x17   :  { %s673_s22 = sld [smem:[#allocation2 + $0x7]]  ;;  %s675_s23 = sld [smem:[#allocation2 + $0x8]] }
  0x18   :  { %v39_v14 = vadd.s32 1, %v484_v12  ;;  %v246_v17 = vadd.s32 1, %v492_v13  ;;  %v588_v22 = vshll.u32 %v37_v15, 8  ;;  %v590_v24 = vshll.u32 %v244_v16, 8  ;;  %s684_s24 = sld [smem:[#allocation2 + $0x6]] }
  0x1a   :  { %vm40_vm0 = vcmp.gt.s32.totalorder %v39_v14, 0  ;;  %vm247_vm1 = vcmp.gt.s32.totalorder %v246_v17, 0 }
  0x1b   :  { %v41_v18 = vsel %vm40_vm0, %v39_v14, 0  ;;  %v248_v21 = vsel %vm247_vm1, %v246_v17, 0  ;;  %vm238_vm0 = vcmp.lt.s32.totalorder %v578_v3, 0  ;;  %vm237_vm1 = vcmp.le.f32.partialorder %v236_v6, 0.7853982 }
  0x1c   :  { %v42_v19 = vshrl.u32 %v41_v18, 5  ;;  %v43_v20 = vand.u32 31, %v41_v18  ;;  %v250_v23 = vand.u32 31, %v248_v21  ;;  %v592_v36 = vshrl.u32 %v248_v21, 5 }
  0x1e   :  { %v44_v25 = vsub.s32 32, %v43_v20  ;;  %v46_v27 = vshll.u32 %v546_v26, %v43_v20  ;;  %v49_v29 = vshll.u32 %v547_v28, %v43_v20  ;;  %v52_v31 = vshll.u32 %v548_v30, %v43_v20 }
  0x1f   :  { %v55_v33 = vshll.u32 %v549_v32, %v43_v20  ;;  %v58_v35 = vshll.u32 %v550_v34, %v43_v20  ;;  %vm61_vm2 = vcmp.lt.s32.totalorder %v42_v19, 1  ;;  %vm62_vm3 = vcmp.lt.s32.totalorder %v42_v19, 2 }
  0x20   :  { %v45_v37 = vshrl.u32 %v546_v26, %v44_v25  ;;  %v47_v38 = vshrl.u32 %v547_v28, %v44_v25  ;;  %v50_v39 = vshrl.u32 %v548_v30, %v44_v25  ;;  %v53_v40 = vshrl.u32 %v549_v32, %v44_v25 }
  0x21   :  { %v56_v41 = vshrl.u32 %v550_v34, %v44_v25  ;;  %v59_v43 = vshrl.u32 %v551_v42, %v44_v25  ;;  %vm64_vm4 = vcmp.lt.s32.totalorder %v42_v19, 4  ;;  %v251_v47 = vsub.s32 32, %v250_v23 }
  0x22   :  { %v48_v44 = vor.u32 %v47_v38, %v46_v27  ;;  %v51_v45 = vor.u32 %v50_v39, %v49_v29  ;;  %v54_v46 = vor.u32 %v53_v40, %v52_v31  ;;  %vm63_vm5 = vcmp.lt.s32.totalorder %v42_v19, 3 }
  0x23   :  { %v57_v48 = vor.u32 %v56_v41, %v55_v33  ;;  %v60_v49 = vor.u32 %v59_v43, %v58_v35  ;;  %v253_v50 = vshll.u32 %v546_v26, %v250_v23  ;;  %v256_v58 = vshll.u32 %v547_v28, %v250_v23 }
  0x24   :  { %v65_v51 = vsel %vm61_vm2, %v45_v37, %v48_v44  ;;  %v66_v52 = vsel %vm64_vm4, %v54_v46, 2102212464  ;;  %v69_v53 = vsel %vm61_vm2, %v48_v44, %v51_v45  ;;  %v73_v54 = vsel %vm61_vm2, %v51_v45, %v54_v46 }
  0x25   :  { %v67_v55 = vsel %vm63_vm5, %v51_v45, %v66_v52  ;;  %v70_v56 = vsel %vm64_vm4, %v57_v48, 920167782  ;;  %v74_v57 = vsel %vm64_vm4, %v60_v49, 1326507024  ;;  %v252_v61 = vshrl.u32 %v546_v26, %v251_v47 }
  0x26   :  { %v71_v59 = vsel %vm63_vm5, %v54_v46, %v70_v56  ;;  %v75_v60 = vsel %vm63_vm5, %v57_v48, %v74_v57  ;;  %v254_v62 = vshrl.u32 %v547_v28, %v251_v47  ;;  %v68_v63 = vsel %vm62_vm3, %v65_v51, %v67_v55 }
  0x27   :  { %v72_v0 = vsel %vm62_vm3, %v69_v53, %v71_v59  ;;  %v76_v1 = vsel %vm62_vm3, %v73_v54, %v75_v60  ;;  %v257_v5 = vshrl.u32 %v548_v30, %v251_v47  ;;  %v259_v13 = vshll.u32 %v548_v30, %v250_v23 }
  0x28   :  { %v601_v7 = vmul.u32.u64.low %v588_v22, %v76_v1  ;;  %v602_v8 = vmul.u32.u64.high %v588_v22, %v76_v1, %v601_v7  ;;  %v605_v9 = vmul.u32.u64.low %v588_v22, %v72_v0  ;;  %v606_v10 = vmul.u32.u64.high %v588_v22, %v72_v0, %v605_v9 }
  0x29   :  { %v255_v11 = vor.u32 %v254_v62, %v253_v50  ;;  %v258_v12 = vor.u32 %v257_v5, %v256_v58  ;;  %v260_v14 = vshrl.u32 %v549_v32, %v251_v47  ;;  %v262_v15 = vshll.u32 %v549_v32, %v250_v23 }
  0x2a   :  { %v263_v16 = vshrl.u32 %v550_v34, %v251_v47  ;;  %v265_v17 = vshll.u32 %v550_v34, %v250_v23  ;;  %v266_v18 = vshrl.u32 %v551_v42, %v251_v47  ;;  %v84_v19 = vmul.u32 %v588_v22, %v68_v63 }
  0x2b   :  { %v261_v20 = vor.u32 %v260_v14, %v259_v13  ;;  %vm268_vm6 = vcmp.lt.s32.totalorder %v592_v36, 1  ;;  %vm269_vm7 = vcmp.lt.s32.totalorder %v592_v36, 2  ;;  %vm86_vm8 = vc.u32 %v602_v8, %v605_v9 }
  0x2c   :  { %v87_v21 = vadd.s32 1, %v606_v10  ;;  %v264_v25 = vor.u32 %v263_v16, %v262_v15  ;;  %vm270_vm9 = vcmp.lt.s32.totalorder %v592_v36, 3  ;;  %v267_v26 = vor.u32 %v266_v18, %v265_v17 }
  0x2d   :  { %vm271_vm10 = vcmp.lt.s32.totalorder %v592_v36, 4  ;;  %v272_v27 = vsel %vm268_vm6, %v252_v61, %v255_v11  ;;  %v276_v23 = vsel %vm268_vm6, %v255_v11, %v258_v12  ;;  %v280_v30 = vsel %vm268_vm6, %v258_v12, %v261_v20 }
  0x2e   :  { %v88_v28 = vsel %vm86_vm8, %v87_v21, %v606_v10  ;;  %v273_v22 = vsel %vm271_vm10, %v261_v20, 2102212464  ;;  %v277_v29 = vsel %vm271_vm10, %v264_v25, 920167782  ;;  %v281_v34 = vsel %vm271_vm10, %v267_v26, 1326507024 }
  0x2f   :  { %v89_v31 = vadd.s32 %v88_v28, %v84_v19  ;;  %v274_v32 = vsel %vm270_vm9, %v258_v12, %v273_v22  ;;  %v278_v33 = vsel %vm270_vm9, %v261_v20, %v277_v29  ;;  %v282_v38 = vsel %vm270_vm9, %v264_v25, %v281_v34 }
  0x30   :  { %v275_v35 = vsel %vm269_vm7, %v272_v27, %v274_v32  ;;  %v279_v37 = vsel %vm269_vm7, %v276_v23, %v278_v33  ;;  %v283_v40 = vsel %vm269_vm7, %v280_v30, %v282_v38  ;;  %vm328_vm2 = vweird.f32 %v578_v3 }
  0x31   :  { %v90_v39 = vadd.s32 536870912, %v89_v31  ;;  %v623_v41 = vmul.u32.u64.low %v590_v24, %v279_v37  ;;  %v624_v42 = vmul.u32.u64.high %v590_v24, %v279_v37, %v623_v41  ;;  %v291_v46 = vmul.u32 %v590_v24, %v275_v35 }
  0x32   :  { %v627_v43 = vmul.u32.u64.low %v590_v24, %v283_v40  ;;  %v628_v44 = vmul.u32.u64.high %v590_v24, %v283_v40, %v627_v43  ;;  %v85_v24 = vadd.s32 %v605_v9, %v602_v8  ;;  %vm121_vm3 = vweird.f32 %v576_v2 }
  0x33   :  { %v630_v45 = vshrl.u32 %v90_v39, 30  ;;  %v294_v48 = vadd.s32 1, %v624_v42 }
  0x34   :  { %vm293_vm11 = vc.u32 %v628_v44, %v623_v41  ;;  %v292_v15 = vadd.s32 %v623_v41, %v628_v44 }
  0x35   :  { %v92_v47 = vshll.u32 %v630_v45, 30  ;;  %v295_v49 = vsel %vm293_vm11, %v294_v48, %v624_v42  ;;  %v115_v33 = vsub.s32 4, %v630_v45 }
  0x36   :  { %v296_v50 = vadd.s32 %v295_v49, %v291_v46  ;;  %v447_v49 = vstv %s658_s0 }
  0x37   :  { %v93_v36 = vsub.s32 %v89_v31, %v92_v47  ;;  %v116_v37 = vsel %vm31_vm14, %v115_v33, %v630_v45 }
  0x38   :  { %v297_v52 = vadd.s32 536870912, %v296_v50  ;;  %v118_v6 = vsel %vm642_vm15, 0, %v116_v37 }
  0x39   :  { %v95_v51 = vsub.s32 0, %v93_v36  ;;  %v225_v42 = vadd.s32 3, %v118_v6  ;;  %v122_v44 = vand.u32 3, %v118_v6 }
  0x3a   :  { %v298_v54 = vshrl.u32 %v297_v52, 30  ;;  %v457_v52 = vstv %s665_s19 }
  0x3b   :  { %v485_v53 = vmin.u32 %v95_v51, %v93_v36  ;;  %v226_v48 = vand.u32 3, %v225_v42  ;;  %v455_v51 = vstv %s669_s20  ;;  %vm123_vm4 = vcmp.lt.s32.totalorder %v122_v44, 2 }
  0x3c   :  { %v299_v56 = vshll.u32 %v298_v54, 30  ;;  %v322_v32 = vsub.s32 4, %v298_v54  ;;  %vm124_vm5 = vcmp.eq.s32.totalorder %v122_v44, 0  ;;  %vm127_vm6 = vcmp.eq.s32.totalorder %v122_v44, 2 }
  0x3d   :  { %v97_v55 = vclz %v485_v53  ;;  %v460_v53 = vstv %s671_s21  ;;  %vm228_vm9 = vcmp.eq.s32.totalorder %v226_v48, 0 }
  0x3e   :  { %v300_v58 = vsub.s32 %v296_v50, %v299_v56  ;;  %v323_v35 = vsel %vm238_vm0, %v322_v32, %v298_v54  ;;  %v450_v50 = vstv %s663_s18  ;;  %v465_v56 = vstv %s673_s22 }
  0x3f   :  { %v486_v57 = vadd.s32 4294967294, %v97_v55  ;;  %v325_v40 = vsel %vm237_vm1, 0, %v323_v35 }
  0x40   :  { %v302_v60 = vsub.s32 0, %v300_v58  ;;  %v432_v41 = vadd.s32 3, %v325_v40  ;;  %v329_v46 = vand.u32 3, %v325_v40 }
  0x41   :  { %vm487_vm12 = vcmp.lt.s32.totalorder %v486_v57, 0 }
  0x42   :  { %v100_v59 = vsel %vm487_vm12, 0, %v486_v57  ;;  %v493_v0 = vmin.u32 %v302_v60, %v300_v58  ;;  %v433_v47 = vand.u32 3, %v432_v41  ;;  %vm334_vm7 = vcmp.eq.s32.totalorder %v329_v46, 2 }
  0x43   :  { %v101_v61 = vsub.s32 32, %v100_v59  ;;  %v102_v62 = vshll.u32 %v93_v36, %v100_v59  ;;  %v105_v63 = vsub.s32 4294967266, %v100_v59  ;;  %v445_v36 = vstv %s660_s1 }
  0x44   :  { %v304_v7 = vclz %v493_v0  ;;  %vm438_vm8 = vcmp.eq.s32.totalorder %v433_v47, 2  ;;  %vm331_vm10 = vcmp.eq.s32.totalorder %v329_v46, 0  ;;  %vm435_vm11 = vcmp.eq.s32.totalorder %v433_v47, 0 }
  0x45   :  { %v103_v1 = vshrl.u32 %v85_v24, %v101_v61  ;;  %v106_v5 = vadd.s32 127, %v105_v63  ;;  %vm231_vm12 = vcmp.eq.s32.totalorder %v226_v48, 2 }
  0x46   :  { %v494_v12 = vadd.s32 4294967294, %v304_v7 }
  0x47   :  { %v104_v10 = vor.u32 %v103_v1, %v102_v62  ;;  %v107_v11 = vshll.u32 %v106_v5, 23  ;;  %v470_v5 = vstv %s675_s23 }
  0x48   :  { %vm495_vm13 = vcmp.lt.s32.totalorder %v494_v12, 0 }
  0x49   :  { %v108_v13 = vor.u32 4788187, %v107_v11  ;;  %v111_v14 = vcvt.s32.f32 %v104_v10  ;;  %v307_v8 = vsel %vm495_vm13, 0, %v494_v12  ;;  %vm330_vm13 = vcmp.lt.s32.totalorder %v329_v46, 2 }
  0x4a   :  { %v308_v9 = vsub.s32 32, %v307_v8  ;;  %v309_v17 = vshll.u32 %v300_v58, %v307_v8  ;;  %v312_v18 = vsub.s32 4294967266, %v307_v8 }
  0x4b   :  { %v109_v16 = vand.u32 2147483647, %v108_v13 }
  0x4c   :  { %v310_v20 = vshrl.u32 %v292_v15, %v308_v9  ;;  %v313_v21 = vadd.s32 127, %v312_v18 }
  0x4d   :  { %v112_v19 = vmul.f32 %v111_v14, %v109_v16  ;;  %v467_v16 = vstv %s684_s24 }
  0x4e   :  { %v311_v26 = vor.u32 %v310_v20, %v309_v17  ;;  %v314_v27 = vshll.u32 %v313_v21, 23 }
  0x4f   :  { %v113_v25 = vxor.u32 2147483648, %v112_v19 }
  0x50   :  { %v315_v22 = vor.u32 4788187, %v314_v27  ;;  %v318_v29 = vcvt.s32.f32 %v311_v26 }
  0x51   :  { %v114_v28 = vsel %vm31_vm14, %v113_v25, %v112_v19  ;;  %vm434_vm14 = vcmp.lt.s32.totalorder %v433_v47, 2 }
  0x52   :  { %v117_v30 = vsel %vm642_vm15, %v576_v2, %v114_v28  ;;  %v316_v31 = vand.u32 2147483647, %v315_v22  ;;  %vm227_vm15 = vcmp.lt.s32.totalorder %v226_v48, 2 }
  0x53   :  { %523 = vcosq.f32 %v117_v30 }
  0x54   :  { %v319_v34 = vmul.f32 %v318_v29, %v316_v31  ;;  %525 = vsinq.f32 %v117_v30 }
  0x56   :  { %v320_v4 = vxor.u32 2147483648, %v319_v34 }
  0x58   :  { %v321_v38 = vsel %vm238_vm0, %v320_v4, %v319_v34 }
  0x59   :  { %v324_v39 = vsel %vm237_vm1, %v578_v3, %v321_v38 }
  0x5a   :  { %527 = vcosq.f32 %v324_v39 }
  0x5b   :  { %529 = vsinq.f32 %v324_v39 }
  0x5d   :  { %v524_v43 = vpop.eup %523 }
  0x5e   :  { %v526_v45 = vpop.eup %525  ;;  %v128_v55 = vxor.u32 2147483648, %v524_v43 }
  0x5f   :  { %v125_v54 = vxor.u32 2147483648, %v526_v45 }
  0x60   :  { %v129_v61 = vsel %vm127_vm6, %v128_v55, %v526_v45  ;;  %v233_v10 = vsel %vm231_vm12, %v128_v55, %v526_v45 }
  0x61   :  { %v126_v60 = vsel %vm124_vm5, %v524_v43, %v125_v54  ;;  %v230_v7 = vsel %vm228_vm9, %v524_v43, %v125_v54 }
  0x62   :  { %v130_v13 = vsel %vm123_vm4, %v126_v60, %v129_v61  ;;  %v234_v19 = vsel %vm227_vm15, %v230_v7, %v233_v10 }
  0x63   :  { %v131_v27 = vsel %vm121_vm3, nan, %v130_v13  ;;  %v235_v28 = vsel %vm121_vm3, nan, %v234_v19 }
  0x64   :  { %v528_v57 = vpop.eup %527 }
  0x65   :  { %v530_v58 = vpop.eup %529  ;;  %v335_v24 = vxor.u32 2147483648, %v528_v57 }
  0x66   :  { %v332_v59 = vxor.u32 2147483648, %v530_v58 }
  0x67   :  { %v336_v62 = vsel %vm334_vm7, %v335_v24, %v530_v58  ;;  %v440_v63 = vsel %vm438_vm8, %v335_v24, %v530_v58 }
  0x68   :  { %v333_v0 = vsel %vm331_vm10, %v528_v57, %v332_v59  ;;  %v437_v1 = vsel %vm435_vm11, %v528_v57, %v332_v59 }
  0x69   :  { %v337_v11 = vsel %vm330_vm13, %v333_v0, %v336_v62  ;;  %v441_v12 = vsel %vm434_vm14, %v437_v1, %v440_v63 }
  0x6a   :  { %v338_v14 = vsel %vm328_vm2, nan, %v337_v11  ;;  %v442_v15 = vsel %vm328_vm2, nan, %v441_v12 }
  0x6b   :  { %v446_v8 = vmul.f32 %v445_v36, %v338_v14  ;;  %v451_v9 = vmul.f32 %v450_v50, %v442_v15  ;;  %v456_v17 = vmul.f32 %v455_v51, %v338_v14  ;;  %v461_v18 = vmul.f32 %v460_v53, %v442_v15 }
  0x6c   :  { %v466_v20 = vmul.f32 %v465_v56, %v338_v14  ;;  %v471_v21 = vmul.f32 %v470_v5, %v442_v15 }
  0x6d   :  { %v448_v25 = vadd.f32 %v447_v49, %v446_v8  ;;  %v458_v26 = vadd.f32 %v457_v52, %v456_v17 }
  0x6e   :  { %v468_v23 = vadd.f32 %v467_v16, %v466_v20 }
  0x6f   :  { %v452_v3 = vadd.f32 %v451_v9, %v448_v25  ;;  %v462_v22 = vadd.f32 %v461_v18, %v458_v26 }
  0x70   :  { %v472_v29 = vadd.f32 %v471_v21, %v468_v23 }
  0x71   :  { %v473_v30 = vmul.f32 %v462_v22, %v131_v27 }
  0x72   :  { %v475_v31 = vmul.f32 %v472_v29, %v235_v28 }
  0x73   :  { %v474_v32 = vadd.f32 %v473_v30, %v452_v3 }
  0x75   :  { %v476_v33 = vadd.f32 %v475_v31, %v474_v32 }
  0x77   :  { %477 = vst [vmem:[%s706_s2] sm:$0xff] %v476_v33 }
  0x78   :  { %482 = vsyncpa [#allocation3], 1 }

</bundles_post_ra>
